<compile_context>
chip_gen: v6e
topology: v6e:2x2x1
jax: 0.10.0
libtpu: 0.0.40
codegen_flags: <defaults>
</compile_context>

<pallas_src>
import jax
import jax.numpy as jnp
from jax.experimental import pallas as pl
from jax.experimental.pallas import tpu as pltpu


def _round_up(x: int, m: int) -> int:
    return (x + m - 1) // m * m


def _classifier_kernel(text_ref, ac_ref, w1t_ref, w1a_ref, b1_ref, w2_ref, b2_ref, o_ref):
    # First linear layer: two bf16 MXU dots into one f32 accumulator (no concat).
    h = jnp.dot(text_ref[...], w1t_ref[...], preferred_element_type=jnp.float32)
    h = h + jnp.dot(ac_ref[...], w1a_ref[...], preferred_element_type=jnp.float32)
    h = jnp.maximum(h + b1_ref[...], 0.0)                       # bias + ReLU in f32
    # Second linear layer (bf16 into MXU, f32 accumulation).
    out = jnp.dot(h.astype(w2_ref.dtype), w2_ref[...], preferred_element_type=jnp.float32)
    o_ref[...] = (out + b2_ref[...]).astype(o_ref.dtype)        # lane-dense [TB, 128] store


def simple_audio_text_classifier(text_feats, acoustic_feats, params, *, block_b: int = 256):
    """Forward pass. text_feats: [B, Dt], acoustic_feats: [B, Da] -> [B, num_labels]."""
    w1, b1, w2, b2 = params["w1"], params["b1"], params["w2"], params["b2"]
    B, dt = text_feats.shape
    da = acoustic_feats.shape[1]
    hidden = w1.shape[1]
    num_labels = w2.shape[1]

    h_pad = _round_up(hidden, 128)       # 64  -> 128
    l_pad = _round_up(num_labels, 128)   # 3   -> 128

    # Split + zero-pad weights to lane-dense shapes; cast matmul operands to bf16.
    w1t = jnp.zeros((dt, h_pad), jnp.bfloat16).at[:, :hidden].set(w1[:dt].astype(jnp.bfloat16))
    w1a = jnp.zeros((da, h_pad), jnp.bfloat16).at[:, :hidden].set(w1[dt:].astype(jnp.bfloat16))
    w2p = jnp.zeros((h_pad, l_pad), jnp.bfloat16).at[:hidden, :num_labels].set(
        w2.astype(jnp.bfloat16))
    b1p = jnp.zeros((1, h_pad), jnp.float32).at[:, :hidden].set(
        b1.reshape(1, -1).astype(jnp.float32))
    b2p = jnp.zeros((1, l_pad), jnp.float32).at[:, :num_labels].set(
        b2.reshape(1, -1).astype(jnp.float32))

    # Batch tile: multiple of 8, capped so buffers stay tiny even on v7x (64 MiB VMEM).
    tb = min(block_b, _round_up(B, 8))
    b_pad = _round_up(B, tb)
    text_p = jnp.zeros((b_pad, dt), jnp.bfloat16).at[:B].set(text_feats.astype(jnp.bfloat16))
    ac_p = jnp.zeros((b_pad, da), jnp.bfloat16).at[:B].set(acoustic_feats.astype(jnp.bfloat16))

    grid = (b_pad // tb,)
    out_padded = pl.pallas_call(
        _classifier_kernel,
        grid=grid,
        in_specs=[
            pl.BlockSpec((tb, dt), lambda i: (i, 0)),        # text activations stream over batch
            pl.BlockSpec((tb, da), lambda i: (i, 0)),        # acoustic activations stream
            pl.BlockSpec((dt, h_pad), lambda i: (0, 0)),     # W1_text   (VMEM-resident)
            pl.BlockSpec((da, h_pad), lambda i: (0, 0)),     # W1_ac     (VMEM-resident)
            pl.BlockSpec((1, h_pad), lambda i: (0, 0)),      # b1        (VMEM-resident)
            pl.BlockSpec((h_pad, l_pad), lambda i: (0, 0)),  # W2        (VMEM-resident)
            pl.BlockSpec((1, l_pad), lambda i: (0, 0)),      # b2        (VMEM-resident)
        ],
        out_specs=pl.BlockSpec((tb, l_pad), lambda i: (i, 0)),
        out_shape=jax.ShapeDtypeStruct((b_pad, l_pad), jnp.float32),
        compiler_params=pltpu.CompilerParams(dimension_semantics=("parallel",)),
    )(text_p, ac_p, w1t, w1a, b1p, w2p, b2p)

    return out_padded[:B, :num_labels]


def init_params(key, text_feat_dim, acoustic_feat_dim=16, num_labels=3, hidden=64):
    """Deterministic init mimicking nn.Linear's U(-1/sqrt(fan_in), 1/sqrt(fan_in)).

    Weights stored as [in, out] (transpose of PyTorch's [out, in]).
    """
    d_in = text_feat_dim + acoustic_feat_dim
    k1, k2, k3, k4 = jax.random.split(key, 4)
    s1 = 1.0 / jnp.sqrt(d_in)
    s2 = 1.0 / jnp.sqrt(hidden)
    return {
        "w1": jax.random.uniform(k1, (d_in, hidden), jnp.float32, -s1, s1),
        "b1": jax.random.uniform(k2, (1, hidden), jnp.float32, -s1, s1),
        "w2": jax.random.uniform(k3, (hidden, num_labels), jnp.float32, -s2, s2),
        "b2": jax.random.uniform(k4, (1, num_labels), jnp.float32, -s2, s2),
    }


if __name__ == "__main__":
    key = jax.random.PRNGKey(0)
    k_text, k_ac, k_params = jax.random.split(key, 3)

    batch = 2
    text_feat_dim = 32
    acoustic_feat_dim = 16
    num_labels = 3

    text_feats = jax.random.normal(k_text, (batch, text_feat_dim), jnp.float32)
    acoustic_feats = jax.random.normal(k_ac, (batch, acoustic_feat_dim), jnp.float32)
    params = init_params(k_params, text_feat_dim, acoustic_feat_dim, num_labels)

    out = simple_audio_text_classifier(text_feats, acoustic_feats, params)
    out = jax.block_until_ready(out)
    assert out.shape == (batch, num_labels)

    # Reference 1: plain-f32 PyTorch math (loose tolerance, bf16 matmul inputs).
    combined = jnp.concatenate([text_feats, acoustic_feats], axis=1)
    h_f32 = jnp.maximum(combined @ params["w1"] + params["b1"], 0.0)
    ref_f32 = h_f32 @ params["w2"] + params["b2"]
    assert jnp.allclose(out, ref_f32, atol=5e-2, rtol=5e-2)

    # Reference 2: same bf16-in / f32-accumulate dtype path as the kernel (tight tolerance).
    t16 = text_feats.astype(jnp.bfloat16)
    a16 = acoustic_feats.astype(jnp.bfloat16)
    w1b = params["w1"].astype(jnp.bfloat16)
    w2b = params["w2"].astype(jnp.bfloat16)
    h_b = jnp.maximum(
        jnp.dot(t16, w1b[:text_feat_dim], preferred_element_type=jnp.float32)
        + jnp.dot(a16, w1b[text_feat_dim:], preferred_element_type=jnp.float32)
        + params["b1"],
        0.0,
    )
    ref_b16 = jnp.dot(h_b.astype(jnp.bfloat16), w2b,
                      preferred_element_type=jnp.float32) + params["b2"]
    assert jnp.allclose(out, ref_b16, atol=5e-3, rtol=5e-3)

    print("KERNEL_OK")
</pallas_src>

<mosaic_0001>
module attributes {stable_mosaic.version = 11 : i64} {
  func.func @_classifier_kernel(%arg0: i32, %arg1: memref<8x32xbf16, #tpu.memory_space<vmem>>, %arg2: memref<8x16xbf16, #tpu.memory_space<vmem>>, %arg3: memref<32x128xbf16, #tpu.memory_space<vmem>>, %arg4: memref<16x128xbf16, #tpu.memory_space<vmem>>, %arg5: memref<1x128xf32, #tpu.memory_space<vmem>>, %arg6: memref<128x128xbf16, #tpu.memory_space<vmem>>, %arg7: memref<1x128xf32, #tpu.memory_space<vmem>>, %arg8: memref<8x128xf32, #tpu.memory_space<vmem>>) attributes {dimension_semantics = [#tpu.dimension_semantics<parallel>], iteration_bounds = array<i64: 1>, scalar_prefetch = 0 : i64, scratch_operands = 0 : i64, tpu.core_type = #tpu.core_type<tc>, window_params = [{transform_indices = @transform_0, window_bounds = array<i64: 8, 32>}, {transform_indices = @transform_1, window_bounds = array<i64: 8, 16>}, {pipeline_mode = #tpu.pipeline_mode<synchronous>, transform_indices = @transform_2, window_bounds = array<i64: 32, 128>}, {pipeline_mode = #tpu.pipeline_mode<synchronous>, transform_indices = @transform_3, window_bounds = array<i64: 16, 128>}, {pipeline_mode = #tpu.pipeline_mode<synchronous>, transform_indices = @transform_4, window_bounds = array<i64: 1, 128>}, {pipeline_mode = #tpu.pipeline_mode<synchronous>, transform_indices = @transform_5, window_bounds = array<i64: 128, 128>}, {pipeline_mode = #tpu.pipeline_mode<synchronous>, transform_indices = @transform_6, window_bounds = array<i64: 1, 128>}, {transform_indices = @transform_7, window_bounds = array<i64: 8, 128>}]} {
    %c0 = arith.constant 0 : index
    %c0_0 = arith.constant 0 : index
    %0 = vector.load %arg1[%c0, %c0_0] : memref<8x32xbf16, #tpu.memory_space<vmem>>, vector<8x32xbf16>
    %c0_1 = arith.constant 0 : index
    %c0_2 = arith.constant 0 : index
    %1 = vector.load %arg3[%c0_1, %c0_2] : memref<32x128xbf16, #tpu.memory_space<vmem>>, vector<32x128xbf16>
    %cst = arith.constant dense<0.000000e+00> : vector<8x128xf32>
    %2 = tpu.matmul %0, %1, %cst {dimension_numbers = #tpu.dot_dimension_numbers<[1], [0], [0], [1], [0, 0, 1, 1], [], []>} : vector<8x32xbf16>, vector<32x128xbf16>, vector<8x128xf32> -> vector<8x128xf32>
    %c0_3 = arith.constant 0 : index
    %c0_4 = arith.constant 0 : index
    %3 = vector.load %arg2[%c0_3, %c0_4] : memref<8x16xbf16, #tpu.memory_space<vmem>>, vector<8x16xbf16>
    %c0_5 = arith.constant 0 : index
    %c0_6 = arith.constant 0 : index
    %4 = vector.load %arg4[%c0_5, %c0_6] : memref<16x128xbf16, #tpu.memory_space<vmem>>, vector<16x128xbf16>
    %cst_7 = arith.constant dense<0.000000e+00> : vector<8x128xf32>
    %5 = tpu.matmul %3, %4, %cst_7 {dimension_numbers = #tpu.dot_dimension_numbers<[1], [0], [0], [1], [0, 0, 1, 1], [], []>} : vector<8x16xbf16>, vector<16x128xbf16>, vector<8x128xf32> -> vector<8x128xf32>
    %6 = arith.addf %2, %5 : vector<8x128xf32>
    %c0_8 = arith.constant 0 : index
    %c0_9 = arith.constant 0 : index
    %7 = vector.load %arg5[%c0_8, %c0_9] : memref<1x128xf32, #tpu.memory_space<vmem>>, vector<1x128xf32>
    %8 = vector.broadcast %7 : vector<1x128xf32> to vector<8x128xf32>
    %9 = arith.addf %6, %8 : vector<8x128xf32>
    %cst_10 = arith.constant 0.000000e+00 : f32
    %10 = vector.broadcast %cst_10 : f32 to vector<8x128xf32>
    %11 = arith.maximumf %9, %10 : vector<8x128xf32>
    %12 = arith.truncf %11 : vector<8x128xf32> to vector<8x128xbf16>
    %c0_11 = arith.constant 0 : index
    %c0_12 = arith.constant 0 : index
    %13 = vector.load %arg6[%c0_11, %c0_12] : memref<128x128xbf16, #tpu.memory_space<vmem>>, vector<128x128xbf16>
    %cst_13 = arith.constant dense<0.000000e+00> : vector<8x128xf32>
    %14 = tpu.matmul %12, %13, %cst_13 {dimension_numbers = #tpu.dot_dimension_numbers<[1], [0], [0], [1], [0, 0, 1, 1], [], []>} : vector<8x128xbf16>, vector<128x128xbf16>, vector<8x128xf32> -> vector<8x128xf32>
    %c0_14 = arith.constant 0 : index
    %c0_15 = arith.constant 0 : index
    %15 = vector.load %arg7[%c0_14, %c0_15] : memref<1x128xf32, #tpu.memory_space<vmem>>, vector<1x128xf32>
    %16 = vector.broadcast %15 : vector<1x128xf32> to vector<8x128xf32>
    %17 = arith.addf %14, %16 : vector<8x128xf32>
    %c0_16 = arith.constant 0 : index
    %c0_17 = arith.constant 0 : index
    %18 = vector.load %arg8[%c0_16, %c0_17] : memref<8x128xf32, #tpu.memory_space<vmem>>, vector<8x128xf32>
    tpu.vector_store %arg8[%c0_16, %c0_17], %17 {strides = array<i32>} : memref<8x128xf32, #tpu.memory_space<vmem>>, vector<8x128xf32>,
    return
  }
  func.func @transform_0(%arg0: i32) -> (i32, i32) {
    %c0_i32 = arith.constant 0 : i32
    %c0_i32_0 = arith.constant 0 : i32
    return %arg0, %c0_i32 : i32, i32
  }
  func.func @transform_1(%arg0: i32) -> (i32, i32) {
    %c0_i32 = arith.constant 0 : i32
    %c0_i32_0 = arith.constant 0 : i32
    return %arg0, %c0_i32 : i32, i32
  }
  func.func @transform_2(%arg0: i32) -> (i32, i32) {
    %c0_i32 = arith.constant 0 : i32
    %c0_i32_0 = arith.constant 0 : i32
    %c0_i32_1 = arith.constant 0 : i32
    return %c0_i32, %c0_i32_0 : i32, i32
  }
  func.func @transform_3(%arg0: i32) -> (i32, i32) {
    %c0_i32 = arith.constant 0 : i32
    %c0_i32_0 = arith.constant 0 : i32
    %c0_i32_1 = arith.constant 0 : i32
    return %c0_i32, %c0_i32_0 : i32, i32
  }
  func.func @transform_4(%arg0: i32) -> (i32, i32) {
    %c0_i32 = arith.constant 0 : i32
    %c0_i32_0 = arith.constant 0 : i32
    %c0_i32_1 = arith.constant 0 : i32
    return %c0_i32, %c0_i32_0 : i32, i32
  }
  func.func @transform_5(%arg0: i32) -> (i32, i32) {
    %c0_i32 = arith.constant 0 : i32
    %c0_i32_0 = arith.constant 0 : i32
    %c0_i32_1 = arith.constant 0 : i32
    return %c0_i32, %c0_i32_0 : i32, i32
  }
  func.func @transform_6(%arg0: i32) -> (i32, i32) {
    %c0_i32 = arith.constant 0 : i32
    %c0_i32_0 = arith.constant 0 : i32
    %c0_i32_1 = arith.constant 0 : i32
    return %c0_i32, %c0_i32_0 : i32, i32
  }
  func.func @transform_7(%arg0: i32) -> (i32, i32) {
    %c0_i32 = arith.constant 0 : i32
    %c0_i32_0 = arith.constant 0 : i32
    return %arg0, %c0_i32 : i32, i32
  }
}

</mosaic_0001>

<bundles_post_ra>
// kernel: tpu_custom_call.1
= control target key start
LH: loop header
LB: loop body
LE: loop exit
PB: predicated region body
PF: predicated region fallthrough
CT: control target
= control target key end

     0   :  { %12 = vsyncpa [#allocation3], 0  ;;  %s640_s0 = inlined_call_operand.hbm [shape: bf16[8,32], index: 0, kind: input, shape index: {}]   ;;  %s641_s1 = inlined_call_operand.hbm [shape: bf16[8,16], index: 1, kind: input, shape index: {}]   ;;  %s642_s2 = inlined_call_operand.hbm [shape: bf16[32,128], index: 2, kind: input, shape index: {}]   ;;  %s643_s3 = inlined_call_operand.hbm [shape: bf16[16,128], index: 3, kind: input, shape index: {}]   ;;  %s644_s4 = inlined_call_operand.vmem [shape: f32[1,128], index: 4, kind: input, shape index: {}]   ;;  %s645_s5 = inlined_call_operand.hbm [shape: bf16[128,128], index: 5, kind: input, shape index: {}]   ;;  %s646_s6 = inlined_call_operand.vmem [shape: f32[1,128], index: 6, kind: input, shape index: {}]   ;;  %s647_s7 = inlined_call_operand.hbm [shape: f32[8,128], index: 7, kind: output, shape index: {}]  }
   0x1   :  { %13 = vsyncpa [#allocation6], 0 }
   0x2   :  { %14 = vsyncpa [#allocation9], 0 }
   0x3   :  { %15 = vsyncpa [#allocation4], 0  ;;  %s557_s24 = smov [#allocation5]  }
   0x4   :  { %s32_s25 = sshll.u32 %s557_s24, 4  ;;  %s33_s25 = int_to_ptr.vmem [resolvable:$true] %s32_s25 }
   0x5   :  { %s437_s26 = scalar_lea.vmem %s33_s25, 64  ;;  %p442_p1 = scmp.lt.s32.totalorder %s33_s25, %s33_s25 }
   0x6   :  { %p438_p0 = scmp.ne.s32.totalorder %s33_s25, %s437_s26  ;;  %p443_p2 = scmp.lt.s32.totalorder %s437_s26, %s437_s26 }
   0x8   :  { %p444_p3 = por %p443_p2, %p442_p1 }
   0xa   :  { %p445_p4 = pnand %p444_p3, %p438_p0 }
   0xc   :  { %448 = shalt.err (!%p445_p4)
}
   0xd   :  { %35 = dma.hbm_to_vmem [thread:$0]  %s641_s1, 64, %s33_s25, [#allocation6]  }
   0xe   :  { %s558_s29 = smov [#allocation8]   ;;  %s559_s8 = smov [#allocation2]  }
   0xf   :  { %s53_s30 = sshll.u32 %s558_s29, 4  ;;  %s22_s9 = sshll.u32 %s559_s8, 4  ;;  %s54_s30 = int_to_ptr.vmem [resolvable:$true] %s53_s30  ;;  %s23_s9 = int_to_ptr.vmem [resolvable:$true] %s22_s9 }
  0x10   :  { %s457_s10 = scalar_lea.vmem %s54_s30, 128  ;;  %p462_p6 = scmp.lt.s32.totalorder %s54_s30, %s54_s30 }
  0x11   :  { %p458_p5 = scmp.ne.s32.totalorder %s54_s30, %s457_s10  ;;  %p463_p7 = scmp.lt.s32.totalorder %s457_s10, %s457_s10 }
  0x13   :  { %p464_p8 = por %p463_p7, %p462_p6 }
  0x15   :  { %p465_p9 = pnand %p464_p8, %p458_p5 }
  0x17   :  { %468 = shalt.err (!%p465_p9)
}
  0x18   :  { %s560_s11 = smov 64   ;;  %s561_s12 = smov 4  }
  0x19   :  { %59 = dma.hbm_to_vmem [thread:$0]  %s643_s3, 128, %s54_s30, [#allocation9], %s560_s11, %s560_s11, %s561_s12  }
  0x1a   :  { %s477_s1 = scalar_lea.vmem %s23_s9, 64  ;;  %p482_p11 = scmp.lt.s32.totalorder %s23_s9, %s23_s9 }
  0x1b   :  { %p478_p10 = scmp.ne.s32.totalorder %s23_s9, %s477_s1  ;;  %p483_p12 = scmp.lt.s32.totalorder %s477_s1, %s477_s1 }
  0x1d   :  { %p484_p13 = por %p483_p12, %p482_p11 }
  0x1f   :  { %p485_p0 = pnand %p484_p13, %p478_p10 }
  0x21   :  { %488 = shalt.err (!%p485_p0)
}
  0x22   :  { %25 = dma.hbm_to_vmem [thread:$0]  %s640_s0, 64, %s23_s9, [#allocation3]  }
  0x23   :  { %s562_s17 = smov [#allocation7]   ;;  %s563_s19 = smov [#allocation10]  }
  0x24   :  { %s41_s18 = sshll.u32 %s562_s17, 4  ;;  %s67_s20 = sshll.u32 %s563_s19, 4  ;;  %s42_s18 = int_to_ptr.vmem [resolvable:$true] %s41_s18  ;;  %s68_s20 = int_to_ptr.vmem [resolvable:$true] %s67_s20 }
  0x25   :  { %s497_s21 = scalar_lea.vmem %s42_s18, 256  ;;  %p502_p2 = scmp.lt.s32.totalorder %s42_s18, %s42_s18 }
  0x26   :  { %p498_p1 = scmp.ne.s32.totalorder %s42_s18, %s497_s21  ;;  %p503_p3 = scmp.lt.s32.totalorder %s497_s21, %s497_s21 }
  0x28   :  { %p504_p4 = por %p503_p3, %p502_p2 }
  0x2a   :  { %p505_p5 = pnand %p504_p4, %p498_p1 }
  0x2c   :  { %508 = shalt.err (!%p505_p5)
}
  0x2d   :  { %47 = dma.hbm_to_vmem [thread:$0]  %s642_s2, 256, %s42_s18, [#allocation6], %s560_s11, %s560_s11, %s561_s12  }
  0x2e   :  { %s517_s0 = scalar_lea.vmem %s68_s20, 1024  ;;  %p522_p7 = scmp.lt.s32.totalorder %s68_s20, %s68_s20 }
  0x2f   :  { %p518_p6 = scmp.ne.s32.totalorder %s68_s20, %s517_s0  ;;  %p523_p8 = scmp.lt.s32.totalorder %s517_s0, %s517_s0 }
  0x31   :  { %p524_p9 = por %p523_p8, %p522_p7 }
  0x33   :  { %p525_p10 = pnand %p524_p9, %p518_p6 }
  0x35   :  { %528 = shalt.err (!%p525_p10)
}
  0x36   :  { %73 = dma.hbm_to_vmem [thread:$0]  %s645_s5, 1024, %s68_s20, [#allocation9], %s560_s11, %s560_s11, %s561_s12  }
  0x37   :  { %549 = dma.done.wait [#allocation3], 64  }
  0x38   :  { %550 = vsyncadd [#allocation3], 4294967232 }
  0x39   :  { %551 = dma.done.wait [#allocation6], 320  }
  0x3a   :  { %552 = vsyncadd [#allocation6], 4294966976 }
  0x3b   :  { %553 = dma.done.wait [#allocation9], 1152  }
  0x3c   :  { %554 = vsyncadd [#allocation9], 4294966144  ;;  %v564_v0 = vmov 0.0   ;;  %vm565_vm0 = vmmov 0   ;;  %v418_v1 = vld [vmem:[#allocation8] sm:$0xff]   ;;  %vm106_vm1 = vcmask 130048  }
  0x3d   :  { %374 = vmatprep.subr.bf16.mxu1 %v564_v0  ;;  %376 = vmatprep.mubr.msk.bf16.mxu1 %vm565_vm0, %v564_v0  ;;  %v97_v2 = vld [vmem:[#allocation5] sm:$0xf]  ;;  %v419_v3 = vld [vmem:[#allocation7 + $0x8] sm:$0xff]   ;;  %v421_v4 = vld [vmem:[#allocation10 + $0x38] sm:$0xff]   ;;  %vm162_vm2 = vcmask 261120   ;;  %s566_s27 = smov [#allocation11]  }
  0x3e   :  { %388 = vmatprep.subr.bf16.mxu0 %v564_v0  ;;  %404 = vmatprep.mubr.msk.bf16.mxu0 %vm565_vm0, %v564_v0  ;;  %v420_v5 = vld [vmem:[#allocation7] sm:$0xff]   ;;  %v422_v6 = vld [vmem:[#allocation10 + $0x30] sm:$0xff]   ;;  %v92_v7 = vld [vmem:[#allocation2] sm:$0xf]  ;;  %s334_s28 = sshll.u32 %s566_s27, 4  ;;  %s335_s28 = int_to_ptr.vmem [resolvable:$true] %s334_s28 }
  0x3f   :  { %375 = vmatpush3.bf16.msra.mxu1 %v418_v1  ;;  %389 = vmatpush3.bf16.msra.mxu0 %v421_v4  ;;  %v423_v8 = vld [vmem:[#allocation10 + $0x28] sm:$0xff]   ;;  %v424_v9 = vld [vmem:[#allocation10 + $0x20] sm:$0xff]   ;;  %v425_v10 = vld [vmem:[#allocation10 + $0x18] sm:$0xff]   ;;  %p534_p12 = scmp.lt.s32.totalorder %s335_s28, %s335_s28 }
  0x40   :  { %380 = vmatprep.subr.bf16.mxu1 %v564_v0  ;;  %390 = vmatprep.subr.bf16.mxu0 %v564_v0  ;;  %v426_v11 = vld [vmem:[#allocation10 + $0x10] sm:$0xff]   ;;  %v427_v12 = vld [vmem:[#allocation10 + $0x8] sm:$0xff]   ;;  %v428_v13 = vld [vmem:[#allocation10] sm:$0xff]  }
  0x41   :  { %v350_v19 = vld [vmem:[%s644_s4] ss:$0 sm:$0xff]  ;;  %s529_s4 = scalar_lea.vmem %s335_s28, 128 }
  0x42   :  { %377 = vmatmul.mubr.msk.bf16.vlgmr.msra.gmra.mxu1 %vm106_vm1, %v97_v2  ;;  %v351_v27 = vld [vmem:[%s646_s6] ss:$0 sm:$0xff]  ;;  %p530_p11 = scmp.ne.s32.totalorder %s335_s28, %s529_s4  ;;  %p535_p13 = scmp.lt.s32.totalorder %s529_s4, %s529_s4 }
  0x43   :  { %381 = vmatpush3.bf16.msra.mxu1 %v419_v3  ;;  %384 = vmatprep.mubr.msk.bf16.mxu1 %vm565_vm0, %v564_v0 }
  0x44   :  { %382 = vmatprep.subr.bf16.mxu1 %v564_v0  ;;  %391 = vmatpush3.bf16.msra.mxu0 %v422_v6  ;;  %p536_p0 = por %p535_p13, %p534_p12 }
  0x45   :  { %392 = vmatprep.subr.bf16.mxu0 %v564_v0 }
  0x46   :  { %p537_p1 = pnand %p536_p0, %p530_p11 }
  0x47   :  { %383 = vmatpush3.bf16.msra.mxu1 %v420_v5 }
  0x48   :  { %393 = vmatpush3.bf16.msra.mxu0 %v423_v8 }
  0x49   :  { %394 = vmatprep.subr.bf16.mxu0 %v564_v0 }
  0x4a   :  { %385 = vmatmul.mubr.msk.bf16.vlgmr.msra.gmra.mxu1 %vm162_vm2, %v92_v7 }
  0x4c   :  { %395 = vmatpush3.bf16.msra.mxu0 %v424_v9 }
  0x4d   :  { %396 = vmatprep.subr.bf16.mxu0 %v564_v0 }
  0x50   :  { %397 = vmatpush3.bf16.msra.mxu0 %v425_v10 }
  0x51   :  { %398 = vmatprep.subr.bf16.mxu0 %v564_v0 }
  0x54   :  { %399 = vmatpush3.bf16.msra.mxu0 %v426_v11 }
  0x55   :  { %400 = vmatprep.subr.bf16.mxu0 %v564_v0 }
  0x58   :  { %401 = vmatpush3.bf16.msra.mxu0 %v427_v12 }
  0x59   :  { %402 = vmatprep.subr.bf16.mxu0 %v564_v0 }
  0x5c   :  { %403 = vmatpush3.bf16.msra.mxu0 %v428_v13 }
 0x102   :  { %v144_v14 = vpop.f32.mrf.mxu1 }
 0x104   :  { %v378_v15 = vpop.f32.mrf.mxu1 }
 0x106   :  { %v147_v16 = vpop.f32.mrf.mxu1 }
 0x108   :  { %v379_v17 = vpop.f32.mrf.mxu1 }
 0x10a   :  { %v200_v18 = vpop.f32.mrf.mxu1 }
 0x10b   :  { %v201_v20 = vadd.f32 %v200_v18, %v144_v14 }
 0x10c   :  { %v386_v21 = vpop.f32.mrf.mxu1 }
 0x10d   :  { %v213_v22 = vadd.f32 %v350_v19, %v201_v20 }
 0x10e   :  { %v203_v23 = vpop.f32.mrf.mxu1 }
 0x10f   :  { %v214_v24 = vmax.f32 %v213_v22, 0.0 }
 0x110   :  { %v387_v25 = vpop.f32.mrf.mxu1 }
 0x111   :  { %v215_v26 = vpack.c.bf16 %v214_v24, %v214_v24 }
 0x113   :  { %405 = vmatmul.mubr.bf16.vlgmr.msra.gmra.mxu0 %v215_v26 }
 0x1d3   :  { %v321_v28 = vpop.f32.mrf.mxu0 }
 0x1d4   :  { %v322_v29 = vadd.f32 %v351_v27, %v321_v28 }
 0x1d5   :  { %v406_v30 = vpop.f32.mrf.mxu0 }
 0x1d6   :  { %327 = vst [vmem:[#allocation11] sm:$0xff] %v322_v29 }
 0x1d7   :  { %v324_v31 = vpop.f32.mrf.mxu0 }
 0x1d8   :  { %540 = shalt.err (!%p537_p1)
}
 0x1d9   :  { %337 = dma.vmem_to_hbm [thread:$0]  %s335_s28, 128, %s647_s7, [#allocation4]   ;;  %v407_v32 = vpop.f32.mrf.mxu0 }
 0x1da   :  { %555 = dma.done.wait [#allocation4], 128  }
 0x1db   :  { %556 = vsyncadd [#allocation4], 4294967168 }
 0x1dc   :  { %341 = vsyncpa [#allocation3], 1 }
 0x1dd   :  { %342 = vsyncpa [#allocation6], 1 }
 0x1de   :  { %343 = vsyncpa [#allocation9], 1 }
 0x1df   :  { %344 = vsyncpa [#allocation4], 1 }

</bundles_post_ra>
